<compile_context>
chip_gen: v5e
topology: v5e:2x2
jax: 0.10.0
libtpu: 0.0.40
codegen_flags: <defaults>
</compile_context>

<pallas_src>
from functools import partial

import numpy as np
import jax
import jax.numpy as jnp
from jax.experimental import pallas as pl
from jax.experimental.pallas import tpu as pltpu

GT_RANGE = (-32.0, -32.0, -3.0, 32.0, 32.0, 1.0)  # (x_min, y_min, z_min, x_max, y_max, z_max)
POS_WEIGHT = 50.0
NEG_WEIGHT = 1.0
EPS = 1e-12
_SUB = 8               # sublane height of the per-batch partial-sum accumulator


# ----------------------------- Pallas kernel ------------------------------- #
def _bce_mask_kernel(row_b_ref, col_b_ref, pred_ref, out_ref, *,
                     w_real, pos_w, neg_w):
    h = pl.program_id(1)
    _, TH, Wp = pred_ref.shape
    nb = col_b_ref.shape[1]

    # Output block is revisited across the H-tile axis -> acts as accumulator.
    @pl.when(h == 0)
    def _init():
        out_ref[...] = jnp.zeros_like(out_ref)

    # --- rasterize the temporal GT mask (union of boxes) on the MXU -------- #
    # Box membership is separable: rows vs [y_min, y_max), cols vs [x_min,
    # x_max).  One small standard-form matmul gives per-pixel covering-box
    # counts; counts > 0 is the union.  Construction is vectorized over boxes.
    rb = row_b_ref[0]                                          # (2, nb) int32
    cb = col_b_ref[0]                                          # (nb, 2) int32
    rows = jax.lax.broadcasted_iota(jnp.int32, (TH, nb), 0) + h * TH
    cols = jax.lax.broadcasted_iota(jnp.int32, (nb, Wp), 1)
    row_m = ((rows >= rb[0:1, :]) & (rows < rb[1:2, :])).astype(jnp.float32)  # (TH, nb)
    col_m = ((cols >= cb[:, 0:1]) & (cols < cb[:, 1:2])).astype(jnp.float32)  # (nb, Wp)
    counts = jnp.dot(row_m, col_m, preferred_element_type=jnp.float32)        # (TH, Wp)
    is_pos = counts > 0.0

    # --- hoisted weight tiles; padded lanes (>= w_real) contribute exactly 0 #
    if w_real < Wp:
        lane_ok = jax.lax.broadcasted_iota(jnp.int32, (_SUB, Wp), 1) < w_real
        w_pos_t = jnp.where(lane_ok, jnp.float32(-pos_w), jnp.float32(0.0))
        w_neg_t = jnp.where(lane_ok, jnp.float32(-neg_w), jnp.float32(0.0))
    else:
        w_pos_t = jnp.full((_SUB, Wp), -pos_w, jnp.float32)
        w_neg_t = jnp.full((_SUB, Wp), -neg_w, jnp.float32)

    # --- strip-fused weighted BCE + partial sum (one log per element) ------ #
    acc = out_ref[0]                                           # (_SUB, Wp) f32
    for t in range(TH // _SUB):
        lo, hi = t * _SUB, (t + 1) * _SUB
        p = pred_ref[0, lo:hi, :].astype(jnp.float32)          # upcast in-kernel
        pos = is_pos[lo:hi, :]
        arg = jnp.where(pos, p, 1.0 - p)
        w = jnp.where(pos, w_pos_t, w_neg_t)
        acc = acc + w * jnp.log(arg + EPS)
    out_ref[0] = acc


def temporal_mask_bce_loss_pallas(mask_pred, bounds):
    """mask_pred: [B, H, W] float (any float dtype; upcast in-kernel);
    bounds: [B, NB, 4] int32 = (y_min, y_max, x_min, x_max) per box; all-zero
    rows are padding (empty boxes)."""
    B, H, W = mask_pred.shape
    nb = bounds.shape[1]
    assert H % _SUB == 0, "H must be a multiple of 8 (sublane height)"

    # Lane-dense layout: pad W up to a multiple of 128; padded lanes are
    # weight-masked in-kernel and the mean uses the real B*H*W denominator.
    Wp = ((W + 127) // 128) * 128
    if Wp != W:
        mask_pred = jnp.pad(mask_pred, ((0, 0), (0, 0), (0, Wp - W)),
                            constant_values=0.5)

    # H tiling: keep per-step VMEM small and give the pipeline steps to overlap.
    TH = 128 if (H > 128 and H % 128 == 0) else H

    bounds = bounds.astype(jnp.int32)
    row_bounds = jnp.transpose(bounds[:, :, 0:2], (0, 2, 1))   # (B, 2, nb): y_min row / y_max row
    col_bounds = bounds[:, :, 2:4]                             # (B, nb, 2): x_min, x_max

    kernel = partial(_bce_mask_kernel, w_real=W,
                     pos_w=POS_WEIGHT, neg_w=NEG_WEIGHT)
    bytes_accessed = int(mask_pred.size * mask_pred.dtype.itemsize
                         + row_bounds.size * 4 + col_bounds.size * 4
                         + B * _SUB * Wp * 4)

    partials = pl.pallas_call(
        kernel,
        out_shape=jax.ShapeDtypeStruct((B, _SUB, Wp), jnp.float32),
        grid_spec=pltpu.PrefetchScalarGridSpec(
            num_scalar_prefetch=0,
            grid=(B, H // TH),
            in_specs=[
                pl.BlockSpec((1, 2, nb), lambda b, h: (b, 0, 0)),
                pl.BlockSpec((1, nb, 2), lambda b, h: (b, 0, 0)),
                pl.BlockSpec((1, TH, Wp), lambda b, h: (b, h, 0)),
            ],
            out_specs=pl.BlockSpec((1, _SUB, Wp), lambda b, h: (b, 0, 0)),
        ),
        compiler_params=pltpu.CompilerParams(
            dimension_semantics=("parallel", "arbitrary")),
        cost_estimate=pl.CostEstimate(
            flops=int(8 * B * H * Wp),
            transcendentals=int(B * H * Wp),
            bytes_accessed=bytes_accessed),
    )(row_bounds, col_bounds, mask_pred)

    # Tiny cross-lane reduce over (B, 8, Wp) partial sums; padded lanes are 0.
    return jnp.sum(partials) / jnp.float32(B * H * W)


# ------------------------- host-side glue (box math) ----------------------- #
def _boxes_to_corners2d_np(boxes, order="hwl"):
    """boxes: [N, 7] = (x, y, z, dim1, dim2, dim3, yaw). Returns [N, 4, 3] bottom corners."""
    boxes = np.asarray(boxes, dtype=np.float32)
    if order == "hwl":
        boxes = boxes[:, [0, 1, 2, 5, 4, 3, 6]]            # -> x, y, z, l, w, h, yaw
    template = np.array(
        [[1, 1, -1], [1, -1, -1], [-1, -1, -1], [-1, 1, -1],
         [1, 1, 1], [1, -1, 1], [-1, -1, 1], [-1, 1, 1]], dtype=np.float32) / 2.0
    corners = boxes[:, None, 3:6] * template[None, :, :]   # [N, 8, 3]
    yaw = boxes[:, 6]
    cosa, sina = np.cos(yaw), np.sin(yaw)
    rot = np.zeros((boxes.shape[0], 3, 3), dtype=np.float32)
    rot[:, 0, 0] = cosa
    rot[:, 0, 1] = sina
    rot[:, 1, 0] = -sina
    rot[:, 1, 1] = cosa
    rot[:, 2, 2] = 1.0
    corners = np.einsum("nij,njk->nik", corners, rot)
    corners = corners + boxes[:, None, 0:3]
    return corners[:, :4, :]


def compute_box_bounds(object_bbx_centers, gt_mapping_info, H, W, max_boxes=None):
    """Mirrors create_temporal_gt_mask's box selection + pixel-bound computation.

    max_boxes defaults to MAX_PREDICTIONS rounded up to a multiple of 8, so no
    temporally-recovered box is ever truncated (recovered boxes <= predictions).
    """
    object_bbx_centers = np.asarray(object_bbx_centers)
    B, n_pred = object_bbx_centers.shape[:2]
    if max_boxes is None:
        max_boxes = max(8, ((n_pred + 7) // 8) * 8)
    bounds = np.zeros((B, max_boxes, 4), dtype=np.int32)    # all-zero -> empty region
    w_ratio = W / (GT_RANGE[3] - GT_RANGE[0])
    h_ratio = H / (GT_RANGE[4] - GT_RANGE[1])
    for i in range(B):
        centers = object_bbx_centers[i]
        non_empty = np.where(np.all(centers != 0, axis=1))[0]
        centers = centers[non_empty]
        mapping_info = gt_mapping_info[i]
        temporal_idx = [k for k, o_id in enumerate(mapping_info)
                        if mapping_info[o_id]["temporal_recovered"]]
        centers = centers[temporal_idx]
        if centers.shape[0] == 0:
            continue
        corners = _boxes_to_corners2d_np(centers, order="hwl")
        corners = corners + np.array([GT_RANGE[3], GT_RANGE[4], GT_RANGE[5]], np.float32)
        corners2d = corners[:, :, :2] * np.array([w_ratio, h_ratio], np.float32)
        for j, corner in enumerate(corners2d[:max_boxes]):
            x, y = corner[:, 0], corner[:, 1]
            bounds[i, j] = (int(np.min(y)), int(np.max(y)),
                            int(np.min(x)), int(np.max(x)))
    return jnp.asarray(bounds)


def _ref_loss_np(mask_pred_np, bounds_np):
    """Plain-numpy reference of the forward pass (verification only).
    Note: negative box bounds are clamped to 0 (original torch slicing with a
    negative start would wrap; in-range boxes are identical)."""
    B, H, W = mask_pred_np.shape
    gt = np.zeros((B, H, W), dtype=np.float32)
    for i in range(B):
        for (ymin, ymax, xmin, xmax) in bounds_np[i]:
            gt[i, max(int(ymin), 0):int(ymax), max(int(xmin), 0):int(xmax)] = 1.0
    loss = (-POS_WEIGHT * gt * np.log(mask_pred_np + EPS)
            - NEG_WEIGHT * (1.0 - gt) * np.log(1.0 - mask_pred_np + EPS))
    return loss.mean()


# ----------------------------------- main ----------------------------------- #
if __name__ == "__main__":
    B, H, W = 2, 64, 64
    MAX_PRED = 8

    key = jax.random.PRNGKey(0)
    # Model's native output dtype is bf16: feed bf16, upcast in-kernel.
    mask_pred = jax.nn.sigmoid(jax.random.normal(key, (B, H, W), jnp.float32))
    mask_pred = mask_pred.astype(jnp.bfloat16)

    # object_bbx_centers: [B, MAX_PRED, 7] = (x, y, z, h, w, l, yaw); zero rows are padding.
    centers = np.zeros((B, MAX_PRED, 7), dtype=np.float32)
    centers[0, 0] = [-10.0, 5.0, -1.0, 1.5, 2.0, 4.5, 0.3]
    centers[0, 1] = [8.0, -12.0, -1.0, 1.6, 2.2, 5.0, -0.7]
    centers[0, 2] = [20.0, 15.0, -1.0, 1.4, 1.9, 4.0, 1.2]
    centers[1, 0] = [-5.0, -20.0, -1.0, 1.5, 2.0, 4.5, 2.0]
    centers[1, 1] = [14.0, 3.0, -1.0, 1.7, 2.1, 4.8, 0.0]

    # gt_mapping_info: per-batch dict {object_id: {'temporal_recovered': bool}}
    gt_mapping_info = [
        {101: {"temporal_recovered": True},
         102: {"temporal_recovered": False},
         103: {"temporal_recovered": True}},
        {201: {"temporal_recovered": True},
         202: {"temporal_recovered": False}},
    ]

    bounds = compute_box_bounds(centers, gt_mapping_info, H, W)
    loss = temporal_mask_bce_loss_pallas(mask_pred, bounds)
    loss = jax.block_until_ready(loss)

    # Reference on the same bf16-rounded predictions (upcast to f32).
    mask_pred_f32 = np.asarray(mask_pred.astype(jnp.float32))
    ref = _ref_loss_np(mask_pred_f32, np.asarray(bounds))
    np.testing.assert_allclose(float(loss), float(ref), rtol=3e-4, atol=1e-5)

    print("KERNEL_OK")
</pallas_src>

<mosaic_0001>
module attributes {stable_mosaic.version = 11 : i64} {
  func.func @_bce_mask_kernel(%arg0: i32, %arg1: i32, %arg2: memref<1x2x8xi32, #tpu.memory_space<vmem>>, %arg3: memref<1x8x2xi32, #tpu.memory_space<vmem>>, %arg4: memref<1x64x128xbf16, #tpu.memory_space<vmem>>, %arg5: memref<1x8x128xf32, #tpu.memory_space<vmem>>) attributes {dimension_semantics = [#tpu.dimension_semantics<parallel>, #tpu.dimension_semantics<arbitrary>], iteration_bounds = array<i64: 2, 1>, scalar_prefetch = 0 : i64, scratch_operands = 0 : i64, tpu.core_type = #tpu.core_type<tc>, window_params = [{transform_indices = @transform_0, window_bounds = array<i64: 1, 2, 8>}, {transform_indices = @transform_1, window_bounds = array<i64: 1, 8, 2>}, {transform_indices = @transform_2, window_bounds = array<i64: 1, 64, 128>}, {transform_indices = @transform_3, window_bounds = array<i64: 1, 8, 128>}]} {
    %c0_i32 = arith.constant 0 : i32
    %0 = arith.cmpi eq, %arg1, %c0_i32 : i32
    %1 = arith.extui %0 : i1 to i32
    %c0_i32_0 = arith.constant 0 : i32
    %2 = arith.cmpi ne, %1, %c0_i32_0 : i32
    scf.if %2 {
      %cst_51 = arith.constant 0.000000e+00 : f32
      %151 = vector.broadcast %cst_51 : f32 to vector<1x8x128xf32>
      %c0_52 = arith.constant 0 : index
      %c0_53 = arith.constant 0 : index
      %c0_54 = arith.constant 0 : index
      %152 = vector.load %arg5[%c0_52, %c0_53, %c0_54] : memref<1x8x128xf32, #tpu.memory_space<vmem>>, vector<1x8x128xf32>
      tpu.vector_store %arg5[%c0_52, %c0_53, %c0_54], %151 {strides = array<i32>} : memref<1x8x128xf32, #tpu.memory_space<vmem>>, vector<1x8x128xf32>,
    } else {
    }
    %c0 = arith.constant 0 : index
    %c0_1 = arith.constant 0 : index
    %c0_2 = arith.constant 0 : index
    %3 = vector.load %arg2[%c0, %c0_1, %c0_2] : memref<1x2x8xi32, #tpu.memory_space<vmem>>, vector<1x2x8xi32>
    %4 = vector.shape_cast %3 : vector<1x2x8xi32> to vector<2x8xi32>
    %c0_3 = arith.constant 0 : index
    %c0_4 = arith.constant 0 : index
    %c0_5 = arith.constant 0 : index
    %5 = vector.load %arg3[%c0_3, %c0_4, %c0_5] : memref<1x8x2xi32, #tpu.memory_space<vmem>>, vector<1x8x2xi32>
    %6 = vector.shape_cast %5 : vector<1x8x2xi32> to vector<8x2xi32>
    %7 = tpu.iota {dimensions = array<i32: 0>} : vector<64x8xi32>
    %c64_i32 = arith.constant 64 : i32
    %8 = arith.muli %arg1, %c64_i32 : i32
    %9 = vector.broadcast %8 : i32 to vector<64x8xi32>
    %10 = arith.addi %7, %9 : vector<64x8xi32>
    %11 = tpu.iota {dimensions = array<i32: 1>} : vector<8x128xi32>
    %12 = vector.extract_strided_slice %4 {offsets = [0, 0], sizes = [1, 8], strides = [1, 1]} : vector<2x8xi32> to vector<1x8xi32>
    %13 = vector.broadcast %12 : vector<1x8xi32> to vector<64x8xi32>
    %14 = arith.cmpi sge, %10, %13 : vector<64x8xi32>
    %15 = vector.extract_strided_slice %4 {offsets = [1, 0], sizes = [1, 8], strides = [1, 1]} : vector<2x8xi32> to vector<1x8xi32>
    %16 = vector.broadcast %15 : vector<1x8xi32> to vector<64x8xi32>
    %17 = arith.cmpi slt, %10, %16 : vector<64x8xi32>
    %18 = arith.andi %14, %17 : vector<64x8xi1>
    %19 = arith.extui %18 : vector<64x8xi1> to vector<64x8xi32>
    %20 = arith.sitofp %19 : vector<64x8xi32> to vector<64x8xf32>
    %21 = vector.extract_strided_slice %6 {offsets = [0, 0], sizes = [8, 1], strides = [1, 1]} : vector<8x2xi32> to vector<8x1xi32>
    %22 = vector.broadcast %21 : vector<8x1xi32> to vector<8x128xi32>
    %23 = arith.cmpi sge, %11, %22 : vector<8x128xi32>
    %24 = vector.extract_strided_slice %6 {offsets = [0, 1], sizes = [8, 1], strides = [1, 1]} : vector<8x2xi32> to vector<8x1xi32>
    %25 = vector.broadcast %24 : vector<8x1xi32> to vector<8x128xi32>
    %26 = arith.cmpi slt, %11, %25 : vector<8x128xi32>
    %27 = arith.andi %23, %26 : vector<8x128xi1>
    %28 = arith.extui %27 : vector<8x128xi1> to vector<8x128xi32>
    %29 = arith.sitofp %28 : vector<8x128xi32> to vector<8x128xf32>
    %cst = arith.constant dense<0.000000e+00> : vector<64x128xf32>
    %30 = tpu.matmul %20, %29, %cst {dimension_numbers = #tpu.dot_dimension_numbers<[1], [0], [0], [1], [0, 0, 1, 1], [], []>} : vector<64x8xf32>, vector<8x128xf32>, vector<64x128xf32> -> vector<64x128xf32>
    %cst_6 = arith.constant 0.000000e+00 : f32
    %31 = vector.broadcast %cst_6 : f32 to vector<64x128xf32>
    %32 = arith.cmpf ogt, %30, %31 : vector<64x128xf32>
    %33 = tpu.iota {dimensions = array<i32: 1>} : vector<8x128xi32>
    %c64_i32_7 = arith.constant 64 : i32
    %34 = vector.broadcast %c64_i32_7 : i32 to vector<8x128xi32>
    %35 = arith.cmpi slt, %33, %34 : vector<8x128xi32>
    %cst_8 = arith.constant -5.000000e+01 : f32
    %cst_9 = arith.constant 0.000000e+00 : f32
    %36 = vector.broadcast %cst_8 : f32 to vector<8x128xf32>
    %37 = vector.broadcast %cst_9 : f32 to vector<8x128xf32>
    %38 = arith.select %35, %36, %37 : vector<8x128xi1>, vector<8x128xf32>
    %cst_10 = arith.constant -1.000000e+00 : f32
    %cst_11 = arith.constant 0.000000e+00 : f32
    %39 = vector.broadcast %cst_10 : f32 to vector<8x128xf32>
    %40 = vector.broadcast %cst_11 : f32 to vector<8x128xf32>
    %41 = arith.select %35, %39, %40 : vector<8x128xi1>, vector<8x128xf32>
    %c0_12 = arith.constant 0 : index
    %c0_13 = arith.constant 0 : index
    %c0_14 = arith.constant 0 : index
    %42 = vector.load %arg5[%c0_12, %c0_13, %c0_14] : memref<1x8x128xf32, #tpu.memory_space<vmem>>, vector<1x8x128xf32>
    %43 = vector.shape_cast %42 : vector<1x8x128xf32> to vector<8x128xf32>
    %c0_15 = arith.constant 0 : index
    %c0_16 = arith.constant 0 : index
    %c0_17 = arith.constant 0 : index
    %44 = vector.load %arg4[%c0_15, %c0_16, %c0_17] : memref<1x64x128xbf16, #tpu.memory_space<vmem>>, vector<1x8x128xbf16>
    %45 = vector.shape_cast %44 : vector<1x8x128xbf16> to vector<8x128xbf16>
    %46 = arith.extf %45 : vector<8x128xbf16> to vector<8x128xf32>
    %47 = vector.extract_strided_slice %32 {offsets = [0, 0], sizes = [8, 128], strides = [1, 1]} : vector<64x128xi1> to vector<8x128xi1>
    %cst_18 = arith.constant 1.000000e+00 : f32
    %48 = vector.broadcast %cst_18 : f32 to vector<8x128xf32>
    %49 = arith.subf %48, %46 : vector<8x128xf32>
    %50 = arith.select %47, %46, %49 : vector<8x128xi1>, vector<8x128xf32>
    %51 = arith.select %47, %38, %41 : vector<8x128xi1>, vector<8x128xf32>
    %cst_19 = arith.constant 9.99999996E-13 : f32
    %52 = vector.broadcast %cst_19 : f32 to vector<8x128xf32>
    %53 = arith.addf %50, %52 : vector<8x128xf32>
    %54 = math.log %53 : vector<8x128xf32>
    %55 = arith.mulf %51, %54 : vector<8x128xf32>
    %56 = arith.addf %43, %55 : vector<8x128xf32>
    %c0_20 = arith.constant 0 : index
    %c8 = arith.constant 8 : index
    %c0_21 = arith.constant 0 : index
    %57 = vector.load %arg4[%c0_20, %c8, %c0_21] : memref<1x64x128xbf16, #tpu.memory_space<vmem>>, vector<1x8x128xbf16>
    %58 = vector.shape_cast %57 : vector<1x8x128xbf16> to vector<8x128xbf16>
    %59 = arith.extf %58 : vector<8x128xbf16> to vector<8x128xf32>
    %60 = vector.extract_strided_slice %32 {offsets = [8, 0], sizes = [8, 128], strides = [1, 1]} : vector<64x128xi1> to vector<8x128xi1>
    %cst_22 = arith.constant 1.000000e+00 : f32
    %61 = vector.broadcast %cst_22 : f32 to vector<8x128xf32>
    %62 = arith.subf %61, %59 : vector<8x128xf32>
    %63 = arith.select %60, %59, %62 : vector<8x128xi1>, vector<8x128xf32>
    %64 = arith.select %60, %38, %41 : vector<8x128xi1>, vector<8x128xf32>
    %cst_23 = arith.constant 9.99999996E-13 : f32
    %65 = vector.broadcast %cst_23 : f32 to vector<8x128xf32>
    %66 = arith.addf %63, %65 : vector<8x128xf32>
    %67 = math.log %66 : vector<8x128xf32>
    %68 = arith.mulf %64, %67 : vector<8x128xf32>
    %69 = arith.addf %56, %68 : vector<8x128xf32>
    %c0_24 = arith.constant 0 : index
    %c16 = arith.constant 16 : index
    %c0_25 = arith.constant 0 : index
    %70 = vector.load %arg4[%c0_24, %c16, %c0_25] : memref<1x64x128xbf16, #tpu.memory_space<vmem>>, vector<1x8x128xbf16>
    %71 = vector.shape_cast %70 : vector<1x8x128xbf16> to vector<8x128xbf16>
    %72 = arith.extf %71 : vector<8x128xbf16> to vector<8x128xf32>
    %73 = vector.extract_strided_slice %32 {offsets = [16, 0], sizes = [8, 128], strides = [1, 1]} : vector<64x128xi1> to vector<8x128xi1>
    %cst_26 = arith.constant 1.000000e+00 : f32
    %74 = vector.broadcast %cst_26 : f32 to vector<8x128xf32>
    %75 = arith.subf %74, %72 : vector<8x128xf32>
    %76 = arith.select %73, %72, %75 : vector<8x128xi1>, vector<8x128xf32>
    %77 = arith.select %73, %38, %41 : vector<8x128xi1>, vector<8x128xf32>
    %cst_27 = arith.constant 9.99999996E-13 : f32
    %78 = vector.broadcast %cst_27 : f32 to vector<8x128xf32>
    %79 = arith.addf %76, %78 : vector<8x128xf32>
    %80 = math.log %79 : vector<8x128xf32>
    %81 = arith.mulf %77, %80 : vector<8x128xf32>
    %82 = arith.addf %69, %81 : vector<8x128xf32>
    %c0_28 = arith.constant 0 : index
    %c24 = arith.constant 24 : index
    %c0_29 = arith.constant 0 : index
    %83 = vector.load %arg4[%c0_28, %c24, %c0_29] : memref<1x64x128xbf16, #tpu.memory_space<vmem>>, vector<1x8x128xbf16>
    %84 = vector.shape_cast %83 : vector<1x8x128xbf16> to vector<8x128xbf16>
    %85 = arith.extf %84 : vector<8x128xbf16> to vector<8x128xf32>
    %86 = vector.extract_strided_slice %32 {offsets = [24, 0], sizes = [8, 128], strides = [1, 1]} : vector<64x128xi1> to vector<8x128xi1>
    %cst_30 = arith.constant 1.000000e+00 : f32
    %87 = vector.broadcast %cst_30 : f32 to vector<8x128xf32>
    %88 = arith.subf %87, %85 : vector<8x128xf32>
    %89 = arith.select %86, %85, %88 : vector<8x128xi1>, vector<8x128xf32>
    %90 = arith.select %86, %38, %41 : vector<8x128xi1>, vector<8x128xf32>
    %cst_31 = arith.constant 9.99999996E-13 : f32
    %91 = vector.broadcast %cst_31 : f32 to vector<8x128xf32>
    %92 = arith.addf %89, %91 : vector<8x128xf32>
    %93 = math.log %92 : vector<8x128xf32>
    %94 = arith.mulf %90, %93 : vector<8x128xf32>
    %95 = arith.addf %82, %94 : vector<8x128xf32>
    %c0_32 = arith.constant 0 : index
    %c32 = arith.constant 32 : index
    %c0_33 = arith.constant 0 : index
    %96 = vector.load %arg4[%c0_32, %c32, %c0_33] : memref<1x64x128xbf16, #tpu.memory_space<vmem>>, vector<1x8x128xbf16>
    %97 = vector.shape_cast %96 : vector<1x8x128xbf16> to vector<8x128xbf16>
    %98 = arith.extf %97 : vector<8x128xbf16> to vector<8x128xf32>
    %99 = vector.extract_strided_slice %32 {offsets = [32, 0], sizes = [8, 128], strides = [1, 1]} : vector<64x128xi1> to vector<8x128xi1>
    %cst_34 = arith.constant 1.000000e+00 : f32
    %100 = vector.broadcast %cst_34 : f32 to vector<8x128xf32>
    %101 = arith.subf %100, %98 : vector<8x128xf32>
    %102 = arith.select %99, %98, %101 : vector<8x128xi1>, vector<8x128xf32>
    %103 = arith.select %99, %38, %41 : vector<8x128xi1>, vector<8x128xf32>
    %cst_35 = arith.constant 9.99999996E-13 : f32
    %104 = vector.broadcast %cst_35 : f32 to vector<8x128xf32>
    %105 = arith.addf %102, %104 : vector<8x128xf32>
    %106 = math.log %105 : vector<8x128xf32>
    %107 = arith.mulf %103, %106 : vector<8x128xf32>
    %108 = arith.addf %95, %107 : vector<8x128xf32>
    %c0_36 = arith.constant 0 : index
    %c40 = arith.constant 40 : index
    %c0_37 = arith.constant 0 : index
    %109 = vector.load %arg4[%c0_36, %c40, %c0_37] : memref<1x64x128xbf16, #tpu.memory_space<vmem>>, vector<1x8x128xbf16>
    %110 = vector.shape_cast %109 : vector<1x8x128xbf16> to vector<8x128xbf16>
    %111 = arith.extf %110 : vector<8x128xbf16> to vector<8x128xf32>
    %112 = vector.extract_strided_slice %32 {offsets = [40, 0], sizes = [8, 128], strides = [1, 1]} : vector<64x128xi1> to vector<8x128xi1>
    %cst_38 = arith.constant 1.000000e+00 : f32
    %113 = vector.broadcast %cst_38 : f32 to vector<8x128xf32>
    %114 = arith.subf %113, %111 : vector<8x128xf32>
    %115 = arith.select %112, %111, %114 : vector<8x128xi1>, vector<8x128xf32>
    %116 = arith.select %112, %38, %41 : vector<8x128xi1>, vector<8x128xf32>
    %cst_39 = arith.constant 9.99999996E-13 : f32
    %117 = vector.broadcast %cst_39 : f32 to vector<8x128xf32>
    %118 = arith.addf %115, %117 : vector<8x128xf32>
    %119 = math.log %118 : vector<8x128xf32>
    %120 = arith.mulf %116, %119 : vector<8x128xf32>
    %121 = arith.addf %108, %120 : vector<8x128xf32>
    %c0_40 = arith.constant 0 : index
    %c48 = arith.constant 48 : index
    %c0_41 = arith.constant 0 : index
    %122 = vector.load %arg4[%c0_40, %c48, %c0_41] : memref<1x64x128xbf16, #tpu.memory_space<vmem>>, vector<1x8x128xbf16>
    %123 = vector.shape_cast %122 : vector<1x8x128xbf16> to vector<8x128xbf16>
    %124 = arith.extf %123 : vector<8x128xbf16> to vector<8x128xf32>
    %125 = vector.extract_strided_slice %32 {offsets = [48, 0], sizes = [8, 128], strides = [1, 1]} : vector<64x128xi1> to vector<8x128xi1>
    %cst_42 = arith.constant 1.000000e+00 : f32
    %126 = vector.broadcast %cst_42 : f32 to vector<8x128xf32>
    %127 = arith.subf %126, %124 : vector<8x128xf32>
    %128 = arith.select %125, %124, %127 : vector<8x128xi1>, vector<8x128xf32>
    %129 = arith.select %125, %38, %41 : vector<8x128xi1>, vector<8x128xf32>
    %cst_43 = arith.constant 9.99999996E-13 : f32
    %130 = vector.broadcast %cst_43 : f32 to vector<8x128xf32>
    %131 = arith.addf %128, %130 : vector<8x128xf32>
    %132 = math.log %131 : vector<8x128xf32>
    %133 = arith.mulf %129, %132 : vector<8x128xf32>
    %134 = arith.addf %121, %133 : vector<8x128xf32>
    %c0_44 = arith.constant 0 : index
    %c56 = arith.constant 56 : index
    %c0_45 = arith.constant 0 : index
    %135 = vector.load %arg4[%c0_44, %c56, %c0_45] : memref<1x64x128xbf16, #tpu.memory_space<vmem>>, vector<1x8x128xbf16>
    %136 = vector.shape_cast %135 : vector<1x8x128xbf16> to vector<8x128xbf16>
    %137 = arith.extf %136 : vector<8x128xbf16> to vector<8x128xf32>
    %138 = vector.extract_strided_slice %32 {offsets = [56, 0], sizes = [8, 128], strides = [1, 1]} : vector<64x128xi1> to vector<8x128xi1>
    %cst_46 = arith.constant 1.000000e+00 : f32
    %139 = vector.broadcast %cst_46 : f32 to vector<8x128xf32>
    %140 = arith.subf %139, %137 : vector<8x128xf32>
    %141 = arith.select %138, %137, %140 : vector<8x128xi1>, vector<8x128xf32>
    %142 = arith.select %138, %38, %41 : vector<8x128xi1>, vector<8x128xf32>
    %cst_47 = arith.constant 9.99999996E-13 : f32
    %143 = vector.broadcast %cst_47 : f32 to vector<8x128xf32>
    %144 = arith.addf %141, %143 : vector<8x128xf32>
    %145 = math.log %144 : vector<8x128xf32>
    %146 = arith.mulf %142, %145 : vector<8x128xf32>
    %147 = arith.addf %134, %146 : vector<8x128xf32>
    %c0_48 = arith.constant 0 : index
    %c0_49 = arith.constant 0 : index
    %c0_50 = arith.constant 0 : index
    %148 = vector.load %arg5[%c0_48, %c0_49, %c0_50] : memref<1x8x128xf32, #tpu.memory_space<vmem>>, vector<1x8x128xf32>
    %149 = vector.shape_cast %148 : vector<1x8x128xf32> to vector<8x128xf32>
    %150 = vector.shape_cast %147 : vector<8x128xf32> to vector<1x8x128xf32>
    tpu.vector_store %arg5[%c0_48, %c0_49, %c0_50], %150 {strides = array<i32>} : memref<1x8x128xf32, #tpu.memory_space<vmem>>, vector<1x8x128xf32>,
    return
  }
  func.func @transform_0(%arg0: i32, %arg1: i32) -> (i32, i32, i32) {
    %c0_i32 = arith.constant 0 : i32
    %c0_i32_0 = arith.constant 0 : i32
    %c0_i32_1 = arith.constant 0 : i32
    return %arg0, %c0_i32, %c0_i32_0 : i32, i32, i32
  }
  func.func @transform_1(%arg0: i32, %arg1: i32) -> (i32, i32, i32) {
    %c0_i32 = arith.constant 0 : i32
    %c0_i32_0 = arith.constant 0 : i32
    %c0_i32_1 = arith.constant 0 : i32
    return %arg0, %c0_i32, %c0_i32_0 : i32, i32, i32
  }
  func.func @transform_2(%arg0: i32, %arg1: i32) -> (i32, i32, i32) {
    %c0_i32 = arith.constant 0 : i32
    %c0_i32_0 = arith.constant 0 : i32
    return %arg0, %arg1, %c0_i32 : i32, i32, i32
  }
  func.func @transform_3(%arg0: i32, %arg1: i32) -> (i32, i32, i32) {
    %c0_i32 = arith.constant 0 : i32
    %c0_i32_0 = arith.constant 0 : i32
    %c0_i32_1 = arith.constant 0 : i32
    return %arg0, %c0_i32, %c0_i32_0 : i32, i32, i32
  }
}

</mosaic_0001>

<bundles_post_ra>
// kernel: tpu_custom_call.1
= control target key start
LH: loop header
LB: loop body
LE: loop exit
PB: predicated region body
PF: predicated region fallthrough
CT: control target
= control target key end

     0   :  { %8 = vsyncpa [#allocation3], 0  ;;  %s1069_s0 = inlined_call_operand.vmem [shape: s32[2,2,8], index: 0, kind: input, shape index: {}]   ;;  %s1070_s1 = inlined_call_operand.vmem [shape: s32[2,8,2], index: 1, kind: input, shape index: {}]   ;;  %s1071_s2 = inlined_call_operand.hbm [shape: bf16[2,64,128], index: 2, kind: input, shape index: {}]   ;;  %s1072_s3 = inlined_call_operand.hbm [shape: f32[2,8,128], index: 3, kind: output, shape index: {}]  }
   0x1   :  { %10 = vsyncpa [#allocation3 + $0x1], 0 }
   0x2   :  { %11 = vsyncpa [#allocation4], 0 }
   0x3   :  { %13 = vsyncpa [#allocation4 + $0x1], 0  ;;  %s867_s12 = smov 0   ;;  %s869_s13 = smov 0  }
   0x4   :  { %s871_s14 = smov 0   ;;  %s873_s15 = smov 0  }
   0x5   :  { %s875_s16 = smov 0   ;;  %s877_s17 = smov 0  }
   0x6 LB: > { %s603_s18 = sadd.s32 4294967295, %s839_s17   ;;  %s604_s19 = sadd.s32 4294967294, %s839_s17   ;;  %s839_s17 = sphi %s877_s17, %s19_s17   ;;  %s835_s16 = sphi %s875_s16, %s1085_s16   ;;  %s831_s15 = sphi %s873_s15, %s1084_s15   ;;  %s827_s14 = sphi %s871_s14, %s1083_s14   ;;  %s823_s13 = sphi %s869_s13, %s1082_s13   ;;  %s819_s12 = sphi %s867_s12, %s1081_s12  }
   0x7   : > { %s31_s20 = sadd.s32 1, %s835_s16  ;;  %s92_s21 = sadd.s32 1, %s827_s14 }
   0x8   : > { %p33_p0 = scmp.ge.s32.totalorder %s31_s20, 2  ;;  %p99_p1 = scmp.ne.s32.totalorder %s827_s14, %s823_s13 }
   0x9   : > { %p100_p2 = scmp.eq.s32.totalorder %s839_s17, 0  ;;  %p105_p3 = scmp.ne.s32.totalorder %s823_s13, %s819_s12 }
   0xa   : > { %s1087_s20 = smov (%p33_p0, %s31_s20), 0  ;;  %p106_p5 = scmp.eq.s32.totalorder %s603_s18, 0 }
   0xb   : > { %p908_p4 = por %p100_p2, %p99_p1  ;;  %s87_s23 = ssub.s32 %s835_s16, %s1087_s20 }
   0xc   : > { %p129_p6 = scmp.eq.s32.totalorder %s603_s18, 1  ;;  %p90_p7 = scmp.eq.s32.totalorder %s87_s23, 0 }
   0xd   : > { %p914_p8 = por %p106_p5, %p105_p3  ;;  %p135_p10 = scmp.eq.s32.totalorder %s604_s19, 1 }
   0xe   : > { %p918_p9 = por %p129_p6, %p99_p1  ;;  %p606_p12 = scmp.ge.s32.totalorder %s839_s17, 2 }
   0xf   : > { %s923_s26 = scalar_select %p90_p7, %s827_s14, %s92_s21  }
  0x10   : > { %p925_p11 = por %p135_p10, %p105_p3  ;;  %p653_p13 = scmp.lt.s32.totalorder %s839_s17, 2 }
  0x11   : > { %s169_s28 = sand.u32 1, %s827_s14   ;;  %s637_s30 = sshll.u32 %s835_s16, 5 }
  0x12   : > { %s607_s29 = sshll.u32 %s169_s28, 5  ;;  %s180_s6 = scalar_lea.hbm %s1071_s2, %s637_s30 }
  0x13   : > { %s173_s7 = scalar_lea.vmem [#allocation2], %s607_s29  ;;  %s181_s9 = sshll.u32 %s180_s6, 4  ;;  %s182_s9 = int_to_ptr.hbm [resolvable:$true] %s181_s9 }
  0x14   : > { %s183_s8 = sshll.u32 %s173_s7, 4  ;;  %p646_p0 = pnand %p653_p13, %p908_p4  ;;  %s184_s8 = int_to_ptr.vmem [resolvable:$true] %s183_s8 }
  0x15   : > { %p610_p1 = scmp.ge.s32.totalorder %s839_s17, 1  ;;  %s170_s10 = scalar_lea.sflag [#allocation3], %s169_s28 }
  0x16   : > { %s841_s11 = smov 64   ;;  %s842_s18 = smov 4  }
  0x17   : > { %648 = dma.hbm_to_vmem [thread:$0]  (!%p646_p0), %s182_s9, 512, %s184_s8, %s170_s10, %s841_s11, %s841_s11, %s842_s18  }
  0x18   : > { %p191_p2 = scmp.lt.s32.totalorder %s839_s17, 3 }
  0x1a   : > { %p192_p3 = pnand %p610_p1, %p191_p2 }
  0x1b   : > { %s941_s19 = sand.u32 (!%p192_p3), 1, %s823_s13  }
  0x1c   : > { %195 = sbr.rel (%p192_p3) target bundleno = 335 (0x14f), region = 32  ;;  %s611_s21 = sshll.u32 (!%p192_p3), %s941_s19, 5 }
  0x1d   : > { %s198_s23 = scalar_lea.sflag (!%p192_p3), [#allocation3], %s941_s19  ;;  %s945_s29 = scalar_lea.vmem (!%p192_p3), [#allocation2], %s611_s21 }
  0x21   : > { %810 = dma.done.wait (%p914_p8), %s198_s23, 512  }
  0x22   : > { %812 = vsyncadd (%p914_p8), %s198_s23, 4294966784  ;;  %p233_p4 = scmp.lt.s32.totalorder %s831_s15, 1  ;;  %v843_v0 = vmov 0   ;;  %v844_v2 = vmov 1   ;;  %v249_v3 = vlaneseq  ;;  %v845_v19 = vmov 0.0   ;;  %v401_v30 = vld [vmem:[%s945_s29] sm:$0xff]  }
  0x23   : > { %709 = vset.pattern.permute.xlu0 %v843_v0  ;;  %vm323_vm15 = vcmask 64512   ;;  %v846_v23 = vmov 1.0   ;;  %v421_v31 = vld [vmem:[%s945_s29 + $0x8] sm:$0xff]   ;;  %v402_v32 = vunpack.c.l.bf16 %v401_v30  ;;  %v441_v35 = vld [vmem:[%s945_s29 + $0x10] sm:$0xff]   ;;  %v461_v40 = vld [vmem:[%s945_s29 + $0x18] sm:$0xff]   ;;  %v412_v43 = vunpack.c.h.bf16 %v401_v30  ;;  %s612_s9 = sshll.u32 %s941_s19, 3 }
  0x24   : > { %s234_s22 = scalar_select %p233_p4, %s831_s15, 1  ;;  %v250_v5 = vshrl.u32 %v249_v3, 7  ;;  %v959_v12 = vand.u32 127, %v249_v3  ;;  %v422_v33 = vunpack.c.l.bf16 %v421_v31  ;;  %v442_v39 = vunpack.c.l.bf16 %v441_v35 }
  0x25   : > { %v403_v34 = vsub.f32 1.0, %v402_v32  ;;  %v432_v44 = vunpack.c.h.bf16 %v421_v31  ;;  %v462_v46 = vunpack.c.l.bf16 %v461_v40  ;;  %v413_v51 = vsub.f32 1.0, %v412_v43  ;;  %s634_s10 = sshll.u32 %s831_s15, 3  ;;  %s232_s15 = scalar_lea.vmem [#allocation5], %s612_s9 }
  0x26   : > { %s614_s28 = sshll.u32 %s234_s22, 3  ;;  %s613_s6 = sshll.u32 %s234_s22, 1  ;;  %v252_v9 = vadd.s32 16, %v250_v5  ;;  %v254_v10 = vadd.s32 32, %v250_v5  ;;  %v256_v11 = vadd.s32 48, %v250_v5  ;;  %v251_v13 = vadd.s32 8, %v250_v5 }
  0x27   : > { %s240_s5 = scalar_lea.vmem %s1070_s1, %s614_s28  ;;  %s236_s8 = scalar_lea.vmem %s1069_s0, %s613_s6  ;;  %v253_v15 = vadd.s32 24, %v250_v5  ;;  %v255_v18 = vadd.s32 40, %v250_v5  ;;  %v257_v21 = vadd.s32 56, %v250_v5  ;;  %v423_v38 = vsub.f32 1.0, %v422_v33 }
  0x28   : > { %v248_v1 = vld [vmem:[%s240_s5] sm:$0xff]  ;;  %v443_v47 = vsub.f32 1.0, %v442_v39  ;;  %v433_v52 = vsub.f32 1.0, %v432_v44  ;;  %v463_v53 = vsub.f32 1.0, %v462_v46  ;;  %v452_v57 = vunpack.c.h.bf16 %v441_v35  ;;  %s493_s21 = scalar_lea.hbm %s1072_s3, %s634_s10  ;;  %s495_s23 = sshll.u32 %s232_s15, 4  ;;  %s496_s23 = int_to_ptr.vmem [resolvable:$true] %s495_s23 }
  0x29   : > { %313 = vperm.xlu0 %709, %v248_v1   ;;  %v247_v4 = vld [vmem:[%s236_s8] sm:$0x3]  ;;  %v472_v58 = vunpack.c.h.bf16 %v461_v40  ;;  %s497_s29 = sshll.u32 %s493_s21, 4  ;;  %s483_s22 = scalar_lea.sflag [#allocation4], %s941_s19  ;;  %s498_s29 = int_to_ptr.hbm [resolvable:$true] %s497_s29 }
  0x2a   : > { %v270_v6 = vperm.slane %v247_v4, 0  ;;  %v279_v7 = vperm.slane %v247_v4, 1  ;;  %s771_s28 = sshra.s32 %s498_s29, 4  ;;  %s777_s6 = scalar_lea.hbm %s1072_s3, 16  ;;  %s772_s28 = int_to_ptr.hbm [resolvable:$true] %s771_s28 }
  0x2b   : > { %v473_v3 = vsub.f32 1.0, %v472_v58  ;;  %s773_s30 = scalar_lea.hbm %s772_s28, 8  ;;  %p778_p8 = scmp.lt.s32.totalorder %s772_s28, %s1072_s3 }
  0x2c   : > { %vm271_vm0 = vcmp.ge.s32.totalorder %v250_v5, %v270_v6  ;;  %vm280_vm1 = vcmp.lt.s32.totalorder %v250_v5, %v279_v7  ;;  %vm273_vm2 = vcmp.ge.s32.totalorder %v252_v9, %v270_v6  ;;  %vm282_vm3 = vcmp.lt.s32.totalorder %v252_v9, %v279_v7  ;;  %p774_p5 = scmp.ne.s32.totalorder %s772_s28, %s773_s30  ;;  %p779_p10 = scmp.lt.s32.totalorder %s777_s6, %s773_s30 }
  0x2d   : > { %vm275_vm4 = vcmp.ge.s32.totalorder %v254_v10, %v270_v6  ;;  %vm284_vm5 = vcmp.lt.s32.totalorder %v254_v10, %v279_v7  ;;  %vm288_vm6 = vmand %vm271_vm0, %vm280_vm1  ;;  %vm277_vm7 = vcmp.ge.s32.totalorder %v256_v11, %v270_v6  ;;  %vm286_vm8 = vcmp.lt.s32.totalorder %v256_v11, %v279_v7 }
  0x2e   : > { %vm290_vm9 = vmand %vm273_vm2, %vm282_vm3  ;;  %v615_v20 = vsel %vm288_vm6, 1.0, %v845_v19  ;;  %vm272_vm0 = vcmp.ge.s32.totalorder %v251_v13, %v270_v6  ;;  %vm281_vm1 = vcmp.lt.s32.totalorder %v251_v13, %v279_v7  ;;  %vm274_vm2 = vcmp.ge.s32.totalorder %v253_v15, %v270_v6  ;;  %p775_p6 = pnand %p774_p5, %p918_p9  ;;  %p780_p13 = por %p779_p10, %p778_p8 }
  0x2f   : > { %vm961_vm10 = vmand %vm275_vm4, %vm284_vm5  ;;  %v617_v22 = vsel %vm290_vm9, 1.0, %v845_v19  ;;  %vm283_vm3 = vcmp.lt.s32.totalorder %v253_v15, %v279_v7  ;;  %vm276_vm4 = vcmp.ge.s32.totalorder %v255_v18, %v270_v6  ;;  %vm285_vm5 = vcmp.lt.s32.totalorder %v255_v18, %v279_v7 }
  0x30   : > { %vm965_vm11 = vmand %vm277_vm7, %vm286_vm8  ;;  %v619_v24 = vsel %vm961_vm10, 1.0, %v845_v19  ;;  %vm278_vm7 = vcmp.ge.s32.totalorder %v257_v21, %v270_v6  ;;  %vm287_vm8 = vcmp.lt.s32.totalorder %v257_v21, %v279_v7  ;;  %p776_p7 = pneg %p775_p6 }
  0x31   : > { %710 = vset.pattern.permute.xlu0 %v844_v2  ;;  %v621_v25 = vsel %vm965_vm11, 1.0, %v845_v19  ;;  %vm289_vm6 = vmand %vm272_vm0, %vm281_vm1  ;;  %v453_v2 = vsub.f32 1.0, %v452_v57 }
  0x32   : > { %317 = vperm.xlu0 %710, %v248_v1   ;;  %vm291_vm9 = vmand %vm274_vm2, %vm283_vm3  ;;  %v616_v26 = vsel %vm289_vm6, 1.0, %v845_v19  ;;  %vm397_vm2 = vcmp.lt.s32.totalorder %v959_v12, 64  ;;  %p781_p0 = pnand %p780_p13, %p776_p7 }
  0x33   : > { %vm293_vm10 = vmand %vm276_vm4, %vm285_vm5  ;;  %v618_v27 = vsel %vm291_vm9, 1.0, %v845_v19  ;;  %v398_v4 = vsel %vm397_vm2, -50.0, %v845_v19  ;;  %v399_v5 = vsel %vm397_vm2, -1.0, %v845_v19 }
  0x34   : > { %vm295_vm11 = vmand %vm278_vm7, %vm287_vm8  ;;  %v620_v28 = vsel %vm293_vm10, 1.0, %v845_v19 }
  0x35   : > { %v622_v29 = vsel %vm295_vm11, 1.0, %v845_v19 }
  0x9b   : > { %v314_v8 = vpop.permute.xlu0 %313 }
  0x9c   : > { %vm315_vm12 = vcmp.ge.s32.totalorder %v959_v12, %v314_v8 }
  0xa4   : > { %v318_v16 = vpop.permute.xlu0 %317 }
  0xa5   : > { %vm319_vm13 = vcmp.lt.s32.totalorder %v959_v12, %v318_v16 }
  0xa6   : > { %vm320_vm14 = vmand %vm315_vm12, %vm319_vm13 }
  0xa7   : > { %624 = vmatpush.msk.msra.mxu0 %vm320_vm14, %v846_v23  ;;  %638 = vmatpush.msk.msra.mxu1 %vm320_vm14, %v846_v23 }
  0xa8   : > { %639 = vmatpush.msk.msra.mxu2 %vm320_vm14, %v846_v23  ;;  %640 = vmatpush.msk.msra.mxu3 %vm320_vm14, %v846_v23 }
  0xa9   : > { %625 = vmatmul.msk.f32.vlgmr.msra.gmra.mxu0 %vm323_vm15, %v615_v20  ;;  %627 = vmatmul.msk.f32.vlgmr.msra.gmra.mxu1 %vm323_vm15, %v617_v22 }
  0xaa   : > { %629 = vmatmul.msk.f32.vlgmr.msra.gmra.mxu2 %vm323_vm15, %v619_v24  ;;  %631 = vmatmul.msk.f32.vlgmr.msra.gmra.mxu3 %vm323_vm15, %v621_v25 }
  0xb1   : > { %626 = vmatmul.msk.f32.gmra.mxu0 %vm323_vm15, %v616_v26  ;;  %628 = vmatmul.msk.f32.gmra.mxu1 %vm323_vm15, %v618_v27 }
  0xb2   : > { %630 = vmatmul.msk.f32.gmra.mxu2 %vm323_vm15, %v620_v28  ;;  %632 = vmatmul.msk.f32.gmra.mxu3 %vm323_vm15, %v622_v29 }
 0x126   : > { %v365_v36 = vpop.f32.mrf.mxu0  ;;  %v995_v37 = vpop.f32.mrf.mxu1 }
 0x127   : > { %vm389_vm12 = vcmp.gt.f32.partialorder %v365_v36, 0.0  ;;  %vm391_vm13 = vcmp.gt.f32.partialorder %v995_v37, 0.0 }
 0x128   : > { %v404_v41 = vsel %vm389_vm12, %v402_v32, %v403_v34  ;;  %v424_v45 = vsel %vm391_vm13, %v422_v33, %v423_v38  ;;  %v405_v13 = vsel %vm389_vm12, %v398_v4, %v399_v5  ;;  %v425_v25 = vsel %vm391_vm13, %v398_v4, %v399_v5 }
 0x129   : > { %v406_v42 = vadd.f32 1e-12, %v404_v41  ;;  %v426_v48 = vadd.f32 1e-12, %v424_v45 }
 0x12b   : > { %711 = vlog2.f32 %v406_v42 }
 0x12c   : > { %713 = vlog2.f32 %v426_v48 }
 0x12d   : > { %v1002_v49 = vpop.f32.mrf.mxu2  ;;  %v1004_v50 = vpop.f32.mrf.mxu3 }
 0x12e   : > { %vm393_vm14 = vcmp.gt.f32.partialorder %v1002_v49, 0.0  ;;  %v368_v54 = vpop.f32.mrf.mxu0  ;;  %v374_v55 = vpop.f32.mrf.mxu1  ;;  %vm395_vm15 = vcmp.gt.f32.partialorder %v1004_v50, 0.0 }
 0x12f   : > { %v444_v56 = vsel %vm393_vm14, %v442_v39, %v443_v47  ;;  %vm390_vm0 = vcmp.gt.f32.partialorder %v368_v54, 0.0  ;;  %vm392_vm1 = vcmp.gt.f32.partialorder %v374_v55, 0.0  ;;  %v464_v63 = vsel %vm395_vm15, %v462_v46, %v463_v53 }
 0x130   : > { %v414_v59 = vsel %vm390_vm0, %v412_v43, %v413_v51  ;;  %v434_v60 = vsel %vm392_vm1, %v432_v44, %v433_v52  ;;  %v446_v62 = vadd.f32 1e-12, %v444_v56  ;;  %v466_v7 = vadd.f32 1e-12, %v464_v63 }
 0x131   : > { %v712_v61 = vpop.eup %711  ;;  %v416_v0 = vadd.f32 1e-12, %v414_v59  ;;  %v436_v1 = vadd.f32 1e-12, %v434_v60  ;;  %v415_v22 = vsel %vm390_vm0, %v398_v4, %v399_v5  ;;  %v435_v31 = vsel %vm392_vm1, %v398_v4, %v399_v5 }
 0x132   : > { %v408_v6 = vmul.f32 0.6931472, %v712_v61  ;;  %v714_v10 = vpop.eup %713  ;;  %v445_v36 = vsel %vm393_vm14, %v398_v4, %v399_v5  ;;  %v465_v44 = vsel %vm395_vm15, %v398_v4, %v399_v5 }
 0x133   : > { %715 = vlog2.f32 %v416_v0  ;;  %v428_v19 = vmul.f32 0.6931472, %v714_v10 }
 0x134   : > { %717 = vlog2.f32 %v436_v1  ;;  %v409_v16 = vmul.f32 %v408_v6, %v405_v13 }
 0x135   : > { %v380_v8 = vpop.f32.mrf.mxu2  ;;  %v386_v9 = vpop.f32.mrf.mxu3  ;;  %719 = vlog2.f32 %v446_v62  ;;  %v429_v27 = vmul.f32 %v428_v19, %v425_v25 }
 0x136   : > { %vm394_vm3 = vcmp.gt.f32.partialorder %v380_v8, 0.0  ;;  %vm396_vm4 = vcmp.gt.f32.partialorder %v386_v9, 0.0  ;;  %721 = vlog2.f32 %v466_v7 }
 0x137   : > { %v454_v11 = vsel %vm394_vm3, %v452_v57, %v453_v2  ;;  %v474_v12 = vsel %vm396_vm4, %v472_v58, %v473_v3  ;;  %v455_v40 = vsel %vm394_vm3, %v398_v4, %v399_v5  ;;  %v475_v47 = vsel %vm396_vm4, %v398_v4, %v399_v5 }
 0x138   : > { %v456_v14 = vadd.f32 1e-12, %v454_v11  ;;  %v476_v15 = vadd.f32 1e-12, %v474_v12 }
 0x139   : > { %v716_v17 = vpop.eup %715 }
 0x13a   : > { %723 = vlog2.f32 %v456_v14  ;;  %v718_v18 = vpop.eup %717  ;;  %v418_v20 = vmul.f32 0.6931472, %v716_v17 }
 0x13b   : > { %v720_v21 = vpop.eup %719  ;;  %725 = vlog2.f32 %v476_v15  ;;  %v438_v24 = vmul.f32 0.6931472, %v718_v18 }
 0x13c   : > { %v419_v23 = vmul.f32 %v418_v20, %v415_v22  ;;  %v722_v26 = vpop.eup %721  ;;  %v448_v28 = vmul.f32 0.6931472, %v720_v21 }
 0x13d   : > { %v439_v33 = vmul.f32 %v438_v24, %v435_v31  ;;  %v468_v39 = vmul.f32 0.6931472, %v722_v26 }
 0x13e   : > { %v420_v29 = vadd.f32 %v419_v23, %v409_v16  ;;  %v449_v38 = vmul.f32 %v448_v28, %v445_v36 }
 0x13f   : > { %v469_v45 = vmul.f32 %v468_v39, %v465_v44 }
 0x140   : > { %v724_v30 = vpop.eup %723  ;;  %v430_v32 = vadd.f32 %v429_v27, %v420_v29 }
 0x141   : > { %v458_v34 = vmul.f32 0.6931472, %v724_v30  ;;  %v726_v35 = vpop.eup %725 }
 0x142   : > { %v440_v37 = vadd.f32 %v439_v33, %v430_v32  ;;  %v478_v43 = vmul.f32 0.6931472, %v726_v35 }
 0x143   : > { %v459_v42 = vmul.f32 %v458_v34, %v455_v40 }
 0x144   : > { %v450_v41 = vadd.f32 %v449_v38, %v440_v37  ;;  %v479_v49 = vmul.f32 %v478_v43, %v475_v47 }
 0x146   : > { %v460_v46 = vadd.f32 %v459_v42, %v450_v41 }
 0x148   : > { %v470_v48 = vadd.f32 %v469_v45, %v460_v46 }
 0x14a   : > { %v480_v51 = vadd.f32 %v479_v49, %v470_v48 }
 0x14c   : > { %481 = vst [vmem:[%s232_s15] sm:$0xff] %v480_v51 }
 0x14d   : > { %784 = shalt.err (!%p781_p0)
}
 0x14e   : > { %643 = dma.vmem_to_hbm [thread:$0]  (%p918_p9), %s496_s23, 128, %s498_s29, %s483_s22  }
 0x14f PF: > { %s509_s19 = sand.u32 1, %s819_s12   ;;  %p650_p1 = pnand %p606_p12, %p925_p11 }
 0x150   : > { %s510_s8 = scalar_lea.sflag [#allocation4], %s509_s19 }
 0x151   : > { %p651_p2 = pneg %p650_p1 }
 0x153   : > { %814 = dma.done.wait (%p651_p2), %s510_s8, 128  }
 0x154   : > { %816 = vsyncadd (%p651_p2), %s510_s8, 4294967168  ;;  %s19_s17 = sadd.s32 1, %s839_s17   ;;  %s1081_s12 = smov %s823_s13 }
 0x155   : > { %p16_p3 = scmp.ge.s32.totalorder %s19_s17, 4   ;;  %s1082_s13 = smov %s827_s14 }
 0x156   : > { %s1083_s14 = smov %s923_s26  ;;  %s1084_s15 = smov %s835_s16 }
 0x157   : > { %s1085_s16 = smov %s1087_s20  ;;  %18 = sbr.rel (!%p16_p3) target bundleno = 6 (0x6), region = 87 }
 0x15c   :  { %516 = vsyncpa [#allocation3], 1 }
 0x15d   :  { %518 = vsyncpa [#allocation3 + $0x1], 1 }
 0x15e   :  { %519 = vsyncpa [#allocation4], 1 }
 0x15f   :  { %521 = vsyncpa [#allocation4 + $0x1], 1 }

</bundles_post_ra>
